<compile_context>
chip_gen: v6e
topology: v6e:2x2x1
jax: 0.10.0
libtpu: 0.0.40
codegen_flags: <defaults>
</compile_context>

<pallas_src>
import jax
import jax.numpy as jnp
from jax.experimental import pallas as pl
from jax.experimental.pallas import tpu as pltpu

IN_FEATURES = 42
HIDDEN = 128
OUT_FEATURES = 7
MAX_TILE_B = 1024  # cap on batch tile (f32: x+h+out tiles ~< 1 MiB, trivial for VMEM)


def _round_up(n, m):
    return ((n + m - 1) // m) * m


def qnetwork_kernel(x_ref, w1_ref, b1_ref, w2_ref, b2_ref, out_ref):
    # x:  [tile_b, 42]
    # w1: [42, 128]     b1: [1, 128]
    # w2: [128, 7]      b2: [1, 7]
    # out: [tile_b, 7]
    h = jnp.dot(x_ref[...], w1_ref[...], preferred_element_type=jnp.float32) + b1_ref[...]
    h = jnp.maximum(h, 0.0)  # ReLU
    y = jnp.dot(h, w2_ref[...], preferred_element_type=jnp.float32) + b2_ref[...]
    out_ref[...] = y.astype(out_ref.dtype)


def prepare_params(w1, b1, w2, b2):
    """One-time parameter prep (hoisted out of the forward): biases as lane rows."""
    w1 = w1.astype(jnp.float32)                              # [42, 128]
    b1 = b1.reshape(1, HIDDEN).astype(jnp.float32)           # [1, 128]
    w2 = w2.astype(jnp.float32)                              # [128, 7]
    b2 = b2.reshape(1, OUT_FEATURES).astype(jnp.float32)     # [1, 7]
    return w1, b1, w2, b2


def _pick_tile_b(B):
    # Batch-aware tile: clamp for tiny batches, cap at MAX_TILE_B, and aim for
    # >=2 grid steps at larger batches so both v7x TensorCores get work.
    return min(MAX_TILE_B, _round_up(max(pl.cdiv(B, 2), 1), 8))


def qnetwork_forward(x, w1, b1, w2, b2, *, tile_b=None):
    """y = relu(x @ w1 + b1) @ w2 + b2 with x:[B,42], w1:[42,128], w2:[128,7].

    b1 may be [128] or [1,128]; b2 may be [7] or [1,7] (use prepare_params once).
    """
    B = x.shape[0]
    if tile_b is None:
        tile_b = _pick_tile_b(B)
    tile_b = _round_up(tile_b, 8)
    b_pad = pl.cdiv(B, tile_b) * tile_b

    x = x.astype(jnp.float32)
    if b_pad != B:
        x = jnp.pad(x, ((0, b_pad - B), (0, 0)))  # zero-pad batch rows only

    b1_2d = b1.reshape(1, HIDDEN).astype(jnp.float32)
    b2_2d = b2.reshape(1, OUT_FEATURES).astype(jnp.float32)
    w1 = w1.astype(jnp.float32)
    w2 = w2.astype(jnp.float32)

    grid = (b_pad // tile_b,)
    out = pl.pallas_call(
        qnetwork_kernel,
        out_shape=jax.ShapeDtypeStruct((b_pad, OUT_FEATURES), jnp.float32),
        grid_spec=pltpu.PrefetchScalarGridSpec(
            num_scalar_prefetch=0,
            grid=grid,
            in_specs=[
                pl.BlockSpec((tile_b, IN_FEATURES), lambda i: (i, 0)),   # x tile (pipelined)
                pl.BlockSpec((IN_FEATURES, HIDDEN), lambda i: (0, 0)),   # w1 (VMEM-resident)
                pl.BlockSpec((1, HIDDEN), lambda i: (0, 0)),             # b1 (VMEM-resident)
                pl.BlockSpec((HIDDEN, OUT_FEATURES), lambda i: (0, 0)),  # w2 (VMEM-resident)
                pl.BlockSpec((1, OUT_FEATURES), lambda i: (0, 0)),       # b2 (VMEM-resident)
            ],
            out_specs=pl.BlockSpec((tile_b, OUT_FEATURES), lambda i: (i, 0)),
        ),
        compiler_params=pltpu.CompilerParams(
            dimension_semantics=("parallel",),  # batch axis shards across TCs on v7x
        ),
    )(x, w1, b1_2d, w2, b2_2d)

    return out[:B] if b_pad != B else out


def init_params(key):
    # Mimic PyTorch nn.Linear default init: U(-1/sqrt(fan_in), 1/sqrt(fan_in)).
    # Weights stored transposed vs. PyTorch ([in, out]) so the kernel does x @ W.
    k1, k2, k3, k4 = jax.random.split(key, 4)
    bound1 = 1.0 / jnp.sqrt(IN_FEATURES)
    bound2 = 1.0 / jnp.sqrt(HIDDEN)
    w1 = jax.random.uniform(k1, (IN_FEATURES, HIDDEN), jnp.float32, -bound1, bound1)
    b1 = jax.random.uniform(k2, (HIDDEN,), jnp.float32, -bound1, bound1)
    w2 = jax.random.uniform(k3, (HIDDEN, OUT_FEATURES), jnp.float32, -bound2, bound2)
    b2 = jax.random.uniform(k4, (OUT_FEATURES,), jnp.float32, -bound2, bound2)
    return w1, b1, w2, b2


def reference_forward(x, w1, b1, w2, b2):
    h = jnp.maximum(x @ w1 + b1.reshape(1, -1), 0.0)
    return h @ w2 + b2.reshape(1, -1)


if __name__ == "__main__":
    key = jax.random.PRNGKey(0)
    k_params, k_x = jax.random.split(key)

    w1, b1, w2, b2 = prepare_params(*init_params(k_params))

    # Small batch of flattened 6x7 Connect-4 boards -> 42 features.
    B = 8
    x = jax.random.normal(k_x, (B, IN_FEATURES), jnp.float32)

    out = jax.block_until_ready(qnetwork_forward(x, w1, b1, w2, b2))
    ref = reference_forward(x, w1, b1, w2, b2)
    assert out.shape == (B, OUT_FEATURES), out.shape
    assert jnp.allclose(out, ref, atol=1e-5, rtol=1e-5), "mismatch vs reference"

    # Multi-tile, non-multiple batch to validate the grid / batch-padding path.
    B2 = 300
    x2 = jax.random.normal(jax.random.PRNGKey(1), (B2, IN_FEATURES), jnp.float32)
    out2 = jax.block_until_ready(qnetwork_forward(x2, w1, b1, w2, b2))
    ref2 = reference_forward(x2, w1, b1, w2, b2)
    assert out2.shape == (B2, OUT_FEATURES)
    assert jnp.allclose(out2, ref2, atol=1e-5, rtol=1e-5), "mismatch vs reference (tiled)"

    # Larger batch exercising the capped 1024-row tile path.
    B3 = 4096
    x3 = jax.random.normal(jax.random.PRNGKey(2), (B3, IN_FEATURES), jnp.float32)
    out3 = jax.block_until_ready(qnetwork_forward(x3, w1, b1, w2, b2))
    ref3 = reference_forward(x3, w1, b1, w2, b2)
    assert out3.shape == (B3, OUT_FEATURES)
    assert jnp.allclose(out3, ref3, atol=1e-5, rtol=1e-5), "mismatch vs reference (large)"

    print("KERNEL_OK")
</pallas_src>

<mosaic_0001>
module attributes {stable_mosaic.version = 11 : i64} {
  func.func @qnetwork_kernel(%arg0: i32, %arg1: memref<8x42xf32, #tpu.memory_space<vmem>>, %arg2: memref<42x128xf32, #tpu.memory_space<vmem>>, %arg3: memref<1x128xf32, #tpu.memory_space<vmem>>, %arg4: memref<128x7xf32, #tpu.memory_space<vmem>>, %arg5: memref<1x7xf32, #tpu.memory_space<vmem>>, %arg6: memref<8x7xf32, #tpu.memory_space<vmem>>) attributes {dimension_semantics = [#tpu.dimension_semantics<parallel>], iteration_bounds = array<i64: 1>, scalar_prefetch = 0 : i64, scratch_operands = 0 : i64, tpu.core_type = #tpu.core_type<tc>, window_params = [{transform_indices = @transform_0, window_bounds = array<i64: 8, 42>}, {pipeline_mode = #tpu.pipeline_mode<synchronous>, transform_indices = @transform_1, window_bounds = array<i64: 42, 128>}, {pipeline_mode = #tpu.pipeline_mode<synchronous>, transform_indices = @transform_2, window_bounds = array<i64: 1, 128>}, {pipeline_mode = #tpu.pipeline_mode<synchronous>, transform_indices = @transform_3, window_bounds = array<i64: 128, 7>}, {pipeline_mode = #tpu.pipeline_mode<synchronous>, transform_indices = @transform_4, window_bounds = array<i64: 1, 7>}, {transform_indices = @transform_5, window_bounds = array<i64: 8, 7>}]} {
    %c0 = arith.constant 0 : index
    %c0_0 = arith.constant 0 : index
    %0 = vector.load %arg1[%c0, %c0_0] : memref<8x42xf32, #tpu.memory_space<vmem>>, vector<8x42xf32>
    %c0_1 = arith.constant 0 : index
    %c0_2 = arith.constant 0 : index
    %1 = vector.load %arg2[%c0_1, %c0_2] : memref<42x128xf32, #tpu.memory_space<vmem>>, vector<42x128xf32>
    %cst = arith.constant dense<0.000000e+00> : vector<8x128xf32>
    %2 = tpu.matmul %0, %1, %cst {dimension_numbers = #tpu.dot_dimension_numbers<[1], [0], [0], [1], [0, 0, 1, 1], [], []>} : vector<8x42xf32>, vector<42x128xf32>, vector<8x128xf32> -> vector<8x128xf32>
    %c0_3 = arith.constant 0 : index
    %c0_4 = arith.constant 0 : index
    %3 = vector.load %arg3[%c0_3, %c0_4] : memref<1x128xf32, #tpu.memory_space<vmem>>, vector<1x128xf32>
    %4 = vector.broadcast %3 : vector<1x128xf32> to vector<8x128xf32>
    %5 = arith.addf %2, %4 : vector<8x128xf32>
    %cst_5 = arith.constant 0.000000e+00 : f32
    %6 = vector.broadcast %cst_5 : f32 to vector<8x128xf32>
    %7 = arith.maximumf %5, %6 : vector<8x128xf32>
    %c0_6 = arith.constant 0 : index
    %c0_7 = arith.constant 0 : index
    %8 = vector.load %arg4[%c0_6, %c0_7] : memref<128x7xf32, #tpu.memory_space<vmem>>, vector<128x7xf32>
    %cst_8 = arith.constant dense<0.000000e+00> : vector<8x7xf32>
    %9 = tpu.matmul %7, %8, %cst_8 {dimension_numbers = #tpu.dot_dimension_numbers<[1], [0], [0], [1], [0, 0, 1, 1], [], []>} : vector<8x128xf32>, vector<128x7xf32>, vector<8x7xf32> -> vector<8x7xf32>
    %c0_9 = arith.constant 0 : index
    %c0_10 = arith.constant 0 : index
    %10 = vector.load %arg5[%c0_9, %c0_10] : memref<1x7xf32, #tpu.memory_space<vmem>>, vector<1x7xf32>
    %11 = vector.broadcast %10 : vector<1x7xf32> to vector<8x7xf32>
    %12 = arith.addf %9, %11 : vector<8x7xf32>
    %c0_11 = arith.constant 0 : index
    %c0_12 = arith.constant 0 : index
    %13 = vector.load %arg6[%c0_11, %c0_12] : memref<8x7xf32, #tpu.memory_space<vmem>>, vector<8x7xf32>
    tpu.vector_store %arg6[%c0_11, %c0_12], %12 {strides = array<i32>} : memref<8x7xf32, #tpu.memory_space<vmem>>, vector<8x7xf32>,
    return
  }
  func.func @transform_0(%arg0: i32) -> (i32, i32) {
    %c0_i32 = arith.constant 0 : i32
    %c0_i32_0 = arith.constant 0 : i32
    return %arg0, %c0_i32 : i32, i32
  }
  func.func @transform_1(%arg0: i32) -> (i32, i32) {
    %c0_i32 = arith.constant 0 : i32
    %c0_i32_0 = arith.constant 0 : i32
    %c0_i32_1 = arith.constant 0 : i32
    return %c0_i32, %c0_i32_0 : i32, i32
  }
  func.func @transform_2(%arg0: i32) -> (i32, i32) {
    %c0_i32 = arith.constant 0 : i32
    %c0_i32_0 = arith.constant 0 : i32
    %c0_i32_1 = arith.constant 0 : i32
    return %c0_i32, %c0_i32_0 : i32, i32
  }
  func.func @transform_3(%arg0: i32) -> (i32, i32) {
    %c0_i32 = arith.constant 0 : i32
    %c0_i32_0 = arith.constant 0 : i32
    %c0_i32_1 = arith.constant 0 : i32
    return %c0_i32, %c0_i32_0 : i32, i32
  }
  func.func @transform_4(%arg0: i32) -> (i32, i32) {
    %c0_i32 = arith.constant 0 : i32
    %c0_i32_0 = arith.constant 0 : i32
    %c0_i32_1 = arith.constant 0 : i32
    return %c0_i32, %c0_i32_0 : i32, i32
  }
  func.func @transform_5(%arg0: i32) -> (i32, i32) {
    %c0_i32 = arith.constant 0 : i32
    %c0_i32_0 = arith.constant 0 : i32
    return %arg0, %c0_i32 : i32, i32
  }
}

</mosaic_0001>

<bundles_post_ra>
// kernel: tpu_custom_call.1
= control target key start
LH: loop header
LB: loop body
LE: loop exit
PB: predicated region body
PF: predicated region fallthrough
CT: control target
= control target key end

     0   :  { %vm39_vm0 = vcmask 1041408   ;;  %v326_v1 = vmov 0.0   ;;  %vm327_vm1 = vmmov 0   ;;  %s463_s0 = inlined_call_operand.vmem [shape: f32[8,42], index: 0, kind: input, shape index: {}]   ;;  %s464_s1 = inlined_call_operand.vmem [shape: f32[42,128], index: 1, kind: input, shape index: {}]   ;;  %s465_s2 = inlined_call_operand.vmem [shape: f32[1,128], index: 2, kind: input, shape index: {}]   ;;  %s466_s3 = inlined_call_operand.vmem [shape: f32[128,7], index: 3, kind: input, shape index: {}]   ;;  %s467_s4 = inlined_call_operand.vmem [shape: f32[1,7], index: 4, kind: input, shape index: {}]   ;;  %s468_s5 = inlined_call_operand.hbm [shape: f32[8,7], index: 5, kind: output, shape index: {}]  }
   0x1   :  { %v27_v0 = vld [vmem:[%s464_s1 + $0x28] sm:$0x3]  ;;  %251 = vmatprep.subr.mxu0 %v326_v1  ;;  %v26_v2 = vld [vmem:[%s464_s1 + $0x20] sm:$0xff]  ;;  %266 = vmatprep.subr.mxu1 %v326_v1  ;;  %v129_v3 = vld [vmem:[%s466_s3 + $0x78] sm:$0xff] }
   0x2   :  { %252 = vmatpush3.msk.msra.mxu0 %vm39_vm0, %v27_v0  ;;  %263 = vmatprep.mubr.msk.f32.mxu0 %vm327_vm1, %v326_v1  ;;  %v128_v4 = vld [vmem:[%s466_s3 + $0x70] sm:$0xff]  ;;  %v25_v5 = vld [vmem:[%s464_s1 + $0x18] sm:$0xff]  ;;  %v127_v6 = vld [vmem:[%s466_s3 + $0x68] sm:$0xff] }
   0x3   :  { %253 = vmatprep.subr.mxu0 %v326_v1  ;;  %267 = vmatpush3.msra.mxu1 %v129_v3  ;;  %v24_v7 = vld [vmem:[%s464_s1 + $0x10] sm:$0xff]  ;;  %v126_v8 = vld [vmem:[%s466_s3 + $0x60] sm:$0xff]  ;;  %v23_v9 = vld [vmem:[%s464_s1 + $0x8] sm:$0xff] }
   0x4   :  { %254 = vmatpush3.msra.mxu0 %v26_v2  ;;  %268 = vmatprep.subr.mxu1 %v326_v1 }
   0x5   :  { %255 = vmatprep.subr.mxu0 %v326_v1  ;;  %269 = vmatpush3.msra.mxu1 %v128_v4 }
   0x6   :  { %256 = vmatpush3.msra.mxu0 %v25_v5  ;;  %270 = vmatprep.subr.mxu1 %v326_v1 }
   0x7   :  { %257 = vmatprep.subr.mxu0 %v326_v1  ;;  %271 = vmatpush3.msra.mxu1 %v127_v6 }
   0x8   :  { %10 = vsyncpa [#allocation3], 0  ;;  %258 = vmatpush3.msra.mxu0 %v24_v7  ;;  %272 = vmatprep.subr.mxu1 %v326_v1  ;;  %v125_v10 = vld [vmem:[%s466_s3 + $0x58] sm:$0xff]  ;;  %v22_v11 = vld [vmem:[%s464_s1] sm:$0xff]  ;;  %vm35_vm2 = vcmask 343040   ;;  %s328_s16 = smov [#allocation2]  }
   0x9   :  { %259 = vmatprep.subr.mxu0 %v326_v1  ;;  %273 = vmatpush3.msra.mxu1 %v126_v8  ;;  %v21_v12 = vld [vmem:[%s463_s0] sm:$0xff]  ;;  %v124_v13 = vld [vmem:[%s466_s3 + $0x50] sm:$0xff]  ;;  %v123_v14 = vld [vmem:[%s466_s3 + $0x48] sm:$0xff]  ;;  %s215_s17 = sshll.u32 %s328_s16, 4  ;;  %vm207_vm3 = vcmask 56320   ;;  %s216_s17 = int_to_ptr.vmem [resolvable:$true] %s215_s17 }
   0xa   :  { %260 = vmatpush3.msra.mxu0 %v23_v9  ;;  %274 = vmatprep.subr.mxu1 %v326_v1  ;;  %v122_v15 = vld [vmem:[%s466_s3 + $0x40] sm:$0xff]  ;;  %v121_v16 = vld [vmem:[%s466_s3 + $0x38] sm:$0xff]  ;;  %v120_v17 = vld [vmem:[%s466_s3 + $0x30] sm:$0xff]  ;;  %p309_p1 = scmp.lt.s32.totalorder %s216_s17, %s216_s17 }
   0xb   :  { %261 = vmatprep.subr.mxu0 %v326_v1  ;;  %275 = vmatpush3.msra.mxu1 %v125_v10  ;;  %v119_v18 = vld [vmem:[%s466_s3 + $0x28] sm:$0xff]  ;;  %v118_v19 = vld [vmem:[%s466_s3 + $0x20] sm:$0xff]  ;;  %v117_v20 = vld [vmem:[%s466_s3 + $0x18] sm:$0xff] }
   0xc   :  { %262 = vmatpush3.msra.mxu0 %v22_v11  ;;  %276 = vmatprep.subr.mxu1 %v326_v1  ;;  %v116_v21 = vld [vmem:[%s466_s3 + $0x10] sm:$0xff]  ;;  %v115_v22 = vld [vmem:[%s466_s3 + $0x8] sm:$0xff]  ;;  %v114_v23 = vld [vmem:[%s466_s3] sm:$0xff]  ;;  %s304_s3 = scalar_lea.vmem %s216_s17, 128 }
   0xd   :  { %264 = vmatmul.mubr.msk.f32.vlgmr.msra.gmra.mxu0 %vm35_vm2, %v21_v12  ;;  %277 = vmatpush3.msra.mxu1 %v124_v13  ;;  %v223_v24 = vld [vmem:[%s465_s2] ss:$0 sm:$0xff]  ;;  %p305_p0 = scmp.ne.s32.totalorder %s216_s17, %s304_s3  ;;  %p310_p2 = scmp.lt.s32.totalorder %s304_s3, %s304_s3 }
   0xe   :  { %278 = vmatprep.subr.mxu1 %v326_v1  ;;  %298 = vmatprep.mubr.msk.f32.mxu1 %vm327_vm1, %v326_v1  ;;  %v226_v29 = vld [vmem:[%s467_s4] ss:$0 sm:$0xff] }
   0xf   :  { %279 = vmatpush3.msra.mxu1 %v123_v14  ;;  %p311_p3 = por %p310_p2, %p309_p1 }
  0x10   :  { %280 = vmatprep.subr.mxu1 %v326_v1 }
  0x11   :  { %281 = vmatpush3.msra.mxu1 %v122_v15  ;;  %p312_p4 = pnand %p311_p3, %p305_p0 }
  0x12   :  { %282 = vmatprep.subr.mxu1 %v326_v1 }
  0x13   :  { %283 = vmatpush3.msra.mxu1 %v121_v16 }
  0x14   :  { %284 = vmatprep.subr.mxu1 %v326_v1 }
  0x15   :  { %285 = vmatpush3.msra.mxu1 %v120_v17 }
  0x16   :  { %286 = vmatprep.subr.mxu1 %v326_v1 }
  0x17   :  { %287 = vmatpush3.msra.mxu1 %v119_v18 }
  0x18   :  { %288 = vmatprep.subr.mxu1 %v326_v1 }
  0x19   :  { %289 = vmatpush3.msra.mxu1 %v118_v19 }
  0x1a   :  { %290 = vmatprep.subr.mxu1 %v326_v1 }
  0x1b   :  { %291 = vmatpush3.msra.mxu1 %v117_v20 }
  0x1c   :  { %292 = vmatprep.subr.mxu1 %v326_v1 }
  0x1d   :  { %293 = vmatpush3.msra.mxu1 %v116_v21 }
  0x1e   :  { %294 = vmatprep.subr.mxu1 %v326_v1 }
  0x1f   :  { %295 = vmatpush3.msra.mxu1 %v115_v22 }
  0x20   :  { %296 = vmatprep.subr.mxu1 %v326_v1 }
  0x21   :  { %297 = vmatpush3.msra.mxu1 %v114_v23 }
  0xcd   :  { %v109_v25 = vpop.f32.mrf.mxu0 }
  0xce   :  { %v110_v26 = vadd.f32 %v223_v24, %v109_v25 }
  0xcf   :  { %v265_v27 = vpop.f32.mrf.mxu0 }
  0xd0   :  { %v113_v28 = vmax.f32 %v110_v26, 0.0 }
  0xd2   :  { %299 = vmatmul.mubr.f32.vlgmr.msra.gmra.mxu1 %v113_v28 }
 0x192   :  { %v203_v30 = vpop.f32.mrf.mxu1 }
 0x193   :  { %v204_v31 = vadd.f32 %v226_v29, %v203_v30 }
 0x194   :  { %v300_v32 = vpop.f32.mrf.mxu1 }
 0x195   :  { %208 = vst.msk [vmem:[#allocation2] sm:$0xff] %vm207_vm3, %v204_v31 }
 0x196   :  { %315 = shalt.err (!%p312_p4)
}
 0x197   :  { %218 = dma.vmem_to_hbm [thread:$0]  %s216_s17, 128, %s468_s5, [#allocation3]  }
 0x198   :  { %324 = dma.done.wait [#allocation3], 128  }
 0x199   :  { %325 = vsyncadd [#allocation3], 4294967168 }
 0x19a   :  { %222 = vsyncpa [#allocation3], 1 }

</bundles_post_ra>
